<compile_context>
chip_gen: v7x
topology: tpu7x:2x2x1
jax: 0.10.0
libtpu: 0.0.40
codegen_flags: <defaults>
</compile_context>

<pallas_src>
import jax
import jax.numpy as jnp
import numpy as np
from jax import lax
from jax.experimental import pallas as pl
from jax.experimental.pallas import tpu as pltpu


def _vmem_limit(est_bytes):
    """Scoped-VMEM limit: 2x headroom over the block accounting, floored at
    32 MiB (v5e's scoped default is 16 MiB) and capped at 48 MiB so it stays
    comfortably inside v7x's 64 MiB physical VMEM (v5e/v6e have 128 MiB)."""
    return int(min(max(2 * est_bytes, 32 << 20), 48 << 20))


# ----------------------------------------------------------------------------
# Kernel 1: hoisted input projection (one bf16 GEMM over all timesteps).
#   x2d: (T*B, D) bf16        w_i: (D, 8H) bf16        b_i: (1, 8H) f32
#   out: (T*B, 8H) f32, columns [fwd i,f,g,o | bwd i,f,g,o]
# ----------------------------------------------------------------------------
def _input_proj_kernel(x_ref, w_ref, b_ref, o_ref):
    o_ref[...] = (
        jnp.dot(x_ref[...], w_ref[...], preferred_element_type=jnp.float32)
        + b_ref[...]
    ).astype(o_ref.dtype)


def _choose_row_tile(R, D, G, budget_bytes):
    # Per-row VMEM: bf16 x (double-buffered) + f32 out (double-buffered).
    per_row = 2 * D * 2 + 2 * G * 4
    cap = int(budget_bytes) // max(1, per_row)
    if cap >= R:
        return R                        # single full block (always layout-legal)
    return max(8, (min(cap, 2048) // 8) * 8)


def _input_projection(x2d, w_i, b_i, *, budget_bytes):
    R, D = x2d.shape
    G = w_i.shape[1]
    tr = _choose_row_tile(R, D, G, budget_bytes)
    nr = (R + tr - 1) // tr
    est = tr * (2 * D * 2 + 2 * G * 4) + 2 * (D * G * 2) + 2 * G * 4
    # NOTE: a partial last row block (R % tr != 0) relies on Pallas padding the
    # OOB input rows and clipping the OOB output rows; the garbage rows are
    # never consumed.
    # TODO(synk): for very large D*8H, also tile the 8H (N) dimension.
    return pl.pallas_call(
        _input_proj_kernel,
        out_shape=jax.ShapeDtypeStruct((R, G), jnp.float32),
        grid_spec=pltpu.PrefetchScalarGridSpec(
            num_scalar_prefetch=0,
            grid=(nr,),
            in_specs=[
                pl.BlockSpec((tr, D), lambda r: (r, 0)),
                pl.BlockSpec((D, G), lambda r: (0, 0)),
                pl.BlockSpec((1, G), lambda r: (0, 0)),
            ],
            out_specs=pl.BlockSpec((tr, G), lambda r: (r, 0)),
        ),
        compiler_params=pltpu.CompilerParams(
            dimension_semantics=("parallel",),
            vmem_limit_bytes=_vmem_limit(est),
        ),
    )(x2d, w_i, b_i)


# ----------------------------------------------------------------------------
# Kernel 2: the recurrence.  grid=(nc,), sequential.  Each grid step processes
# Tc timesteps of BOTH directions; the forward direction walks its chunk
# forwards, the backward direction walks a time-reversed chunk backwards and
# writes its hiddens already in time order.
# ----------------------------------------------------------------------------
def _bilstm_recurrent_kernel(gxf_ref,    # (Tc, B, 4H or 8H) fwd gate pre-acts (time order)
                             gxb_ref,    # (Tc, B, 4H or 8H) bwd gate pre-acts (reversed chunk)
                             wrf_ref,    # (H, 4H) fwd recurrent weights (i/f/o pre-scaled 0.5)
                             wrb_ref,    # (H, 4H) bwd recurrent weights
                             out_f_ref,  # (Tc, B, H) fwd hiddens, time order
                             out_b_ref,  # (Tc, B, H) bwd hiddens, time order
                             hf_ref, cf_ref, hb_ref, cb_ref):  # (B, H) f32 state
    c = pl.program_id(0)
    Tc = gxf_ref.shape[0]
    H = out_f_ref.shape[-1]
    G4 = 4 * H

    @pl.when(c == 0)
    def _init():
        hf_ref[...] = jnp.zeros_like(hf_ref)
        cf_ref[...] = jnp.zeros_like(cf_ref)
        hb_ref[...] = jnp.zeros_like(hb_ref)
        cb_ref[...] = jnp.zeros_like(cb_ref)

    wrf = wrf_ref[...]          # hoisted out of the serial loop
    wrb = wrb_ref[...]

    def cell(z, c_prev):
        # i/f/o columns of w_i, b_i and w_r were pre-scaled by 0.5 on the host,
        # so ONE tanh pass over all 4H columns implements
        # sigmoid(x) = 0.5*(1 + tanh(x/2)) for i/f/o and plain tanh for g.
        t = jnp.tanh(z)
        i_g = 0.5 * (t[:, 0 * H:1 * H] + 1.0)
        f_g = 0.5 * (t[:, 1 * H:2 * H] + 1.0)
        g_g = t[:, 2 * H:3 * H]
        o_g = 0.5 * (t[:, 3 * H:4 * H] + 1.0)
        c_new = f_g * c_prev + i_g * g_g
        h_new = o_g * jnp.tanh(c_new)
        return h_new, c_new

    def step(s, carry):
        hf, cf, hb, cb = carry
        gf = gxf_ref[s][:, :G4]             # fwd walks its chunk forwards
        gb = gxb_ref[Tc - 1 - s][:, -G4:]   # bwd walks its reversed chunk backwards
        zf = gf + jnp.dot(hf, wrf, preferred_element_type=jnp.float32)
        zb = gb + jnp.dot(hb, wrb, preferred_element_type=jnp.float32)
        hf, cf = cell(zf, cf)
        hb, cb = cell(zb, cb)
        out_f_ref[s] = hf.astype(out_f_ref.dtype)
        out_b_ref[Tc - 1 - s] = hb.astype(out_b_ref.dtype)   # time order in HBM
        return hf, cf, hb, cb

    unroll = True if Tc <= 16 else 8
    hf, cf, hb, cb = lax.fori_loop(
        0, Tc, step,
        (hf_ref[...], cf_ref[...], hb_ref[...], cb_ref[...]),
        unroll=unroll)
    hf_ref[...] = hf
    cf_ref[...] = cf
    hb_ref[...] = hb
    cb_ref[...] = cb


# ----------------------------------------------------------------------------
# Host-side weight packing (no zero blocks anywhere).
# ----------------------------------------------------------------------------
def _pack_bilstm_params(params, hidden_dim):
    """Returns:
         w_i: (D, 8H) bf16   columns [fwd i,f,g,o | bwd i,f,g,o]
         b_i: (1, 8H) f32    b_ih + b_hh per direction, same layout
         wrf, wrb: (H, 4H) f32 recurrent weights per direction
       i/f/o columns are pre-scaled by 0.5 (sigmoid-via-tanh trick)."""
    H = hidden_dim
    f32 = jnp.float32
    gate_scale = jnp.concatenate([
        jnp.full((H,), 0.5, f32),   # i
        jnp.full((H,), 0.5, f32),   # f
        jnp.ones((H,), f32),        # g
        jnp.full((H,), 0.5, f32),   # o
    ])

    def one_dir(sfx):
        wih = jnp.asarray(params["weight_ih_l0" + sfx], f32).T * gate_scale   # (D, 4H)
        whh = jnp.asarray(params["weight_hh_l0" + sfx], f32).T * gate_scale   # (H, 4H)
        b = (jnp.asarray(params["bias_ih_l0" + sfx], f32)
             + jnp.asarray(params["bias_hh_l0" + sfx], f32)) * gate_scale     # (4H,)
        return wih, whh, b

    wif, wrf, bf = one_dir("")
    wib, wrb, bb = one_dir("_reverse")
    w_i = jnp.concatenate([wif, wib], axis=1).astype(jnp.bfloat16)            # (D, 8H)
    b_i = jnp.concatenate([bf, bb])[None, :]                                  # (1, 8H)
    return w_i, b_i, wrf, wrb


def _choose_time_chunk(T, per_step_bytes, budget_bytes, max_time_chunk=None):
    """Largest Tc within the VMEM budget; prefer a divisor of T near the cap
    (no padding); otherwise pad T up to a multiple of Tc (never Tc=1 cliffs)."""
    cap = max(1, int(budget_bytes) // max(1, per_step_bytes))
    cap = min(cap, T, 512)
    if max_time_chunk is not None:
        cap = max(1, min(cap, int(max_time_chunk)))
    for d in range(cap, cap // 2, -1):
        if T % d == 0:
            return d, T
    tp = ((T + cap - 1) // cap) * cap
    return cap, tp


# ----------------------------------------------------------------------------
# Forward wrapper: layout plumbing + the two pallas_calls.
# ----------------------------------------------------------------------------
def bilstm_forward(x, params, return_sequences=True,
                   vmem_budget_bytes=20 << 20, max_time_chunk=None):
    """x: (B, T, D) float32, batch_first like the PyTorch module."""
    B, T, D = x.shape
    H = int(params["weight_hh_l0"].shape[1])        # weight_hh: (4H, H)
    G4, G8 = 4 * H, 8 * H

    w_i, b_i, wrf, wrb = _pack_bilstm_params(params, H)

    # TODO(synk): batch-major gx layout would drop both wrapper transposes.
    x_tm = jnp.transpose(x, (1, 0, 2))                               # (T, B, D)
    x2d = x_tm.reshape(T * B, D).astype(jnp.bfloat16)
    gx = _input_projection(x2d, w_i, b_i, budget_bytes=vmem_budget_bytes)
    gx = gx.reshape(T, B, G8)                                        # (T, B, 8H)

    # Column-split the gx reads when the 4H halves are lane-tile aligned;
    # otherwise fall back to full-width blocks (still correct, 2x gx read).
    col_split = (G4 % 128) == 0
    wcol = G4 if col_split else G8
    bwd_col = 1 if col_split else 0

    per_step = 16 * B * (wcol + H) * 1                # f32 bytes per timestep in VMEM
    Tc, Tp = _choose_time_chunk(T, per_step, vmem_budget_bytes, max_time_chunk)
    if Tp != T:
        # Zero pre-activation rows are a fixed point of the cell from a zero
        # state: the backward direction consumes the pad first and reaches the
        # real data with exactly zero state; the forward padded tail is dropped.
        gx = jnp.pad(gx, ((0, Tp - T), (0, 0), (0, 0)))
    nc = Tp // Tc

    est = Tc * per_step + 2 * 2 * (H * G4 * 4) + 4 * B * H * 4
    out_f, out_b = pl.pallas_call(
        _bilstm_recurrent_kernel,
        out_shape=(jax.ShapeDtypeStruct((Tp, B, H), jnp.float32),
                   jax.ShapeDtypeStruct((Tp, B, H), jnp.float32)),
        grid_spec=pltpu.PrefetchScalarGridSpec(
            num_scalar_prefetch=0,
            grid=(nc,),
            in_specs=[
                # forward half of gx, chunks in time order
                pl.BlockSpec((Tc, B, wcol), lambda c: (c, 0, 0)),
                # backward half of gx, chunks in reversed time order
                pl.BlockSpec((Tc, B, wcol), lambda c: (nc - 1 - c, 0, bwd_col)),
                pl.BlockSpec((H, G4), lambda c: (0, 0)),
                pl.BlockSpec((H, G4), lambda c: (0, 0)),
            ],
            out_specs=[
                pl.BlockSpec((Tc, B, H), lambda c: (c, 0, 0)),
                pl.BlockSpec((Tc, B, H), lambda c: (nc - 1 - c, 0, 0)),
            ],
            scratch_shapes=[pltpu.VMEM((B, H), jnp.float32)] * 4,   # h_f, c_f, h_b, c_b
        ),
        compiler_params=pltpu.CompilerParams(
            dimension_semantics=("arbitrary",),      # sequential recurrence
            vmem_limit_bytes=_vmem_limit(est),
        ),
    )(gx, gx, wrf, wrb)

    out = jnp.concatenate([out_f[:T], out_b[:T]], axis=-1)           # (T, B, 2H)
    out = jnp.transpose(out, (1, 0, 2))                              # (B, T, 2H)
    if not return_sequences:
        out = out[:, -1, :]
    return out
    # TODO(synk): n_layers > 1 stacking and inter-layer dropout are not
    # implemented (module defaults: n_layers=1, dropout=0, so inactive).


# ----------------------------------------------------------------------------
# Pure-JAX reference (plain torch.nn.LSTM math via lax.scan) for correctness.
# ----------------------------------------------------------------------------
def bilstm_reference(x, params, return_sequences=True):
    B, T, D = x.shape
    H = params["weight_hh_l0"].shape[1]

    def run_dir(xs, sfx):
        wih = jnp.asarray(params["weight_ih_l0" + sfx])    # (4H, D)
        whh = jnp.asarray(params["weight_hh_l0" + sfx])    # (4H, H)
        b = (jnp.asarray(params["bias_ih_l0" + sfx])
             + jnp.asarray(params["bias_hh_l0" + sfx]))

        def step(carry, x_t):
            h, c = carry
            g = x_t @ wih.T + h @ whh.T + b
            i = jax.nn.sigmoid(g[:, 0 * H:1 * H])
            f = jax.nn.sigmoid(g[:, 1 * H:2 * H])
            gg = jnp.tanh(g[:, 2 * H:3 * H])
            o = jax.nn.sigmoid(g[:, 3 * H:4 * H])
            c = f * c + i * gg
            h = o * jnp.tanh(c)
            return (h, c), h

        h0 = jnp.zeros((B, H), jnp.float32)
        _, hs = lax.scan(step, (h0, h0), xs)
        return hs

    x_tm = jnp.transpose(x, (1, 0, 2)).astype(jnp.float32)
    out_f = run_dir(x_tm, "")
    out_b = run_dir(x_tm[::-1], "_reverse")[::-1]
    out = jnp.transpose(jnp.concatenate([out_f, out_b], axis=-1), (1, 0, 2))
    if not return_sequences:
        out = out[:, -1, :]
    return out


# ----------------------------------------------------------------------------
# Deterministic PyTorch-style init: U(-1/sqrt(H), 1/sqrt(H)).
# ----------------------------------------------------------------------------
def init_bilstm_params(key, input_dim, hidden_dim):
    k = 1.0 / np.sqrt(hidden_dim)
    names_shapes = []
    for sfx in ("", "_reverse"):
        names_shapes += [
            ("weight_ih_l0" + sfx, (4 * hidden_dim, input_dim)),
            ("weight_hh_l0" + sfx, (4 * hidden_dim, hidden_dim)),
            ("bias_ih_l0" + sfx, (4 * hidden_dim,)),
            ("bias_hh_l0" + sfx, (4 * hidden_dim,)),
        ]
    keys = jax.random.split(key, len(names_shapes))
    params = {}
    for (name, shape), kk in zip(names_shapes, keys):
        params[name] = jax.random.uniform(kk, shape, jnp.float32,
                                          minval=-k, maxval=k)
    return params


if __name__ == "__main__":
    B, T, D, H = 2, 8, 16, 32

    root = jax.random.PRNGKey(0)
    k_x, k_p, k_x2 = jax.random.split(root, 3)
    x = jax.random.normal(k_x, (B, T, D), dtype=jnp.float32)
    params = init_bilstm_params(k_p, D, H)

    # bf16 MXU operands in the input projection -> tolerance loosened to 2e-2.
    TOL = dict(atol=2e-2, rtol=2e-2)

    out = jax.block_until_ready(bilstm_forward(x, params, return_sequences=True))
    ref = jax.block_until_ready(bilstm_reference(x, params, return_sequences=True))
    assert out.shape == (B, T, 2 * H), out.shape
    np.testing.assert_allclose(np.asarray(out), np.asarray(ref), **TOL)

    out_last = jax.block_until_ready(
        bilstm_forward(x, params, return_sequences=False))
    ref_last = jax.block_until_ready(
        bilstm_reference(x, params, return_sequences=False))
    assert out_last.shape == (B, 2 * H), out_last.shape
    np.testing.assert_allclose(np.asarray(out_last), np.asarray(ref_last), **TOL)

    # Awkward T: exercises multi-chunk state carry, the reversed backward
    # index maps, and the zero end-padding of the tail (Tc=3, Tp=9, nc=3).
    T2 = 7
    x2 = jax.random.normal(k_x2, (B, T2, D), dtype=jnp.float32)
    out2 = jax.block_until_ready(
        bilstm_forward(x2, params, return_sequences=True, max_time_chunk=3))
    ref2 = jax.block_until_ready(
        bilstm_reference(x2, params, return_sequences=True))
    assert out2.shape == (B, T2, 2 * H), out2.shape
    np.testing.assert_allclose(np.asarray(out2), np.asarray(ref2), **TOL)

    print("KERNEL_OK")
</pallas_src>

<mosaic_0001>
module attributes {stable_mosaic.version = 11 : i64} {
  func.func @_input_proj_kernel(%arg0: i32, %arg1: memref<16x16xbf16, #tpu.memory_space<vmem>>, %arg2: memref<16x256xbf16, #tpu.memory_space<vmem>>, %arg3: memref<1x256xf32, #tpu.memory_space<vmem>>, %arg4: memref<16x256xf32, #tpu.memory_space<vmem>>) attributes {dimension_semantics = [#tpu.dimension_semantics<parallel>], iteration_bounds = array<i64: 1>, scalar_prefetch = 0 : i64, scratch_operands = 0 : i64, tpu.core_type = #tpu.core_type<tc>, window_params = [{transform_indices = @transform_0, window_bounds = array<i64: 16, 16>}, {pipeline_mode = #tpu.pipeline_mode<synchronous>, transform_indices = @transform_1, window_bounds = array<i64: 16, 256>}, {pipeline_mode = #tpu.pipeline_mode<synchronous>, transform_indices = @transform_2, window_bounds = array<i64: 1, 256>}, {transform_indices = @transform_3, window_bounds = array<i64: 16, 256>}]} {
    %c0 = arith.constant 0 : index
    %c0_0 = arith.constant 0 : index
    %0 = vector.load %arg1[%c0, %c0_0] : memref<16x16xbf16, #tpu.memory_space<vmem>>, vector<16x16xbf16>
    %c0_1 = arith.constant 0 : index
    %c0_2 = arith.constant 0 : index
    %1 = vector.load %arg2[%c0_1, %c0_2] : memref<16x256xbf16, #tpu.memory_space<vmem>>, vector<16x256xbf16>
    %cst = arith.constant dense<0.000000e+00> : vector<16x256xf32>
    %2 = tpu.matmul %0, %1, %cst {dimension_numbers = #tpu.dot_dimension_numbers<[1], [0], [0], [1], [0, 0, 1, 1], [], []>} : vector<16x16xbf16>, vector<16x256xbf16>, vector<16x256xf32> -> vector<16x256xf32>
    %c0_3 = arith.constant 0 : index
    %c0_4 = arith.constant 0 : index
    %3 = vector.load %arg3[%c0_3, %c0_4] : memref<1x256xf32, #tpu.memory_space<vmem>>, vector<1x256xf32>
    %4 = vector.broadcast %3 : vector<1x256xf32> to vector<16x256xf32>
    %5 = arith.addf %2, %4 : vector<16x256xf32>
    %c0_5 = arith.constant 0 : index
    %c0_6 = arith.constant 0 : index
    %6 = vector.load %arg4[%c0_5, %c0_6] : memref<16x256xf32, #tpu.memory_space<vmem>>, vector<16x256xf32>
    tpu.vector_store %arg4[%c0_5, %c0_6], %5 {strides = array<i32>} : memref<16x256xf32, #tpu.memory_space<vmem>>, vector<16x256xf32>,
    return
  }
  func.func @transform_0(%arg0: i32) -> (i32, i32) {
    %c0_i32 = arith.constant 0 : i32
    %c0_i32_0 = arith.constant 0 : i32
    return %arg0, %c0_i32 : i32, i32
  }
  func.func @transform_1(%arg0: i32) -> (i32, i32) {
    %c0_i32 = arith.constant 0 : i32
    %c0_i32_0 = arith.constant 0 : i32
    %c0_i32_1 = arith.constant 0 : i32
    return %c0_i32, %c0_i32_0 : i32, i32
  }
  func.func @transform_2(%arg0: i32) -> (i32, i32) {
    %c0_i32 = arith.constant 0 : i32
    %c0_i32_0 = arith.constant 0 : i32
    %c0_i32_1 = arith.constant 0 : i32
    return %c0_i32, %c0_i32_0 : i32, i32
  }
  func.func @transform_3(%arg0: i32) -> (i32, i32) {
    %c0_i32 = arith.constant 0 : i32
    %c0_i32_0 = arith.constant 0 : i32
    return %arg0, %c0_i32 : i32, i32
  }
}

</mosaic_0001>

<bundles_post_ra>
// kernel: tpu_custom_call.1
= control target key start
LH: loop header
LB: loop body
LE: loop exit
PB: predicated region body
PF: predicated region fallthrough
CT: control target
= control target key end

     0   :  { %8 = vsyncpa [#allocation3], 0  ;;  %s303_s0 = inlined_call_operand.hbm [shape: bf16[16,16], index: 0, kind: input, shape index: {}]   ;;  %s304_s1 = inlined_call_operand.hbm [shape: bf16[16,256], index: 1, kind: input, shape index: {}]   ;;  %s305_s2 = inlined_call_operand.vmem [shape: f32[1,256], index: 2, kind: input, shape index: {}]   ;;  %s306_s3 = inlined_call_operand.hbm [shape: f32[16,256], index: 3, kind: output, shape index: {}]  }
   0x1   :  { %9 = vsyncpa [#allocation6], 0 }
   0x2   :  { %10 = vsyncpa [#allocation4], 0  ;;  %s234_s12 = smov [#allocation2]   ;;  %s162_s16 = scalar_lea.hbm %s303_s0, 128 }
   0x3   :  { %s16_s13 = sshll.u32 %s234_s12, 4  ;;  %p163_p0 = scmp.ne.s32.totalorder %s303_s0, %s162_s16  ;;  %s17_s13 = int_to_ptr.vmem [resolvable:$true] %s16_s13 }
   0x4   :  { %p166_p1 = scmp.lt.u32.totalorder %s162_s16, %s303_s0 }
   0x6   :  { %p168_p2 = pnand %p166_p1, %p163_p0 }
   0x8   :  { %171 = shalt.err (!%p168_p2)
}
   0x9   :  { %s172_s21 = scalar_lea.vmem %s17_s13, 128  ;;  %p177_p4 = scmp.lt.s32.totalorder %s17_s13, %s17_s13 }
   0xa   :  { %p173_p3 = scmp.ne.s32.totalorder %s17_s13, %s172_s21  ;;  %p178_p5 = scmp.lt.s32.totalorder %s172_s21, %s172_s21 }
   0xc   :  { %p179_p6 = por %p178_p5, %p177_p4 }
   0xe   :  { %p180_p7 = pnand %p179_p6, %p173_p3 }
  0x10   :  { %183 = shalt.err (!%p180_p7)
}
  0x11   :  { %s235_s22 = smov 64   ;;  %s236_s23 = smov 4  }
  0x12   :  { %22 = dma.hbm_to_vmem [thread:$0]  %s303_s0, 128, %s17_s13, [#allocation3], %s235_s22, %s235_s22, %s236_s23  }
  0x13   :  { %s237_s26 = smov [#allocation5]   ;;  %s184_s30 = scalar_lea.hbm %s304_s1, 256 }
  0x14   :  { %s28_s27 = sshll.u32 %s237_s26, 4  ;;  %p185_p8 = scmp.ne.s32.totalorder %s304_s1, %s184_s30  ;;  %s29_s27 = int_to_ptr.vmem [resolvable:$true] %s28_s27 }
  0x15   :  { %p188_p9 = scmp.lt.u32.totalorder %s184_s30, %s304_s1 }
  0x17   :  { %p190_p10 = pnand %p188_p9, %p185_p8 }
  0x19   :  { %193 = shalt.err (!%p190_p10)
}
  0x1a   :  { %s194_s8 = scalar_lea.vmem %s29_s27, 256  ;;  %p199_p12 = scmp.lt.s32.totalorder %s29_s27, %s29_s27 }
  0x1b   :  { %p195_p11 = scmp.ne.s32.totalorder %s29_s27, %s194_s8  ;;  %p200_p13 = scmp.lt.s32.totalorder %s194_s8, %s194_s8 }
  0x1d   :  { %p201_p0 = por %p200_p13, %p199_p12 }
  0x1f   :  { %p202_p1 = pnand %p201_p0, %p195_p11 }
  0x21   :  { %205 = shalt.err (!%p202_p1)
}
  0x22   :  { %s238_s0 = smov 128   ;;  %s239_s9 = smov 8  }
  0x23   :  { %34 = dma.hbm_to_vmem [thread:$0]  %s304_s1, 256, %s29_s27, [#allocation6], %s238_s0, %s238_s0, %s239_s9  }
  0x24   :  { %228 = dma.done.wait [#allocation3], 128  }
  0x25   :  { %229 = vsyncadd [#allocation3], 4294967168 }
  0x26   :  { %230 = dma.done.wait [#allocation6], 256  }
  0x27   :  { %231 = vsyncadd [#allocation6], 4294967040  ;;  %v240_v0 = vmov 0   ;;  %v158_v1 = vld [vmem:[#allocation5 + $0x4] ss:$8 sps:$4 sm:$0xff]   ;;  %v161_v3 = vld [vmem:[#allocation2] sm:$0xff]   ;;  %v50_v4 = vlaneseq }
  0x28   :  { %111 = vmatprep.mubr.bf16.mxu0 %v240_v0  ;;  %v160_v2 = vld [vmem:[#allocation5] ss:$8 sps:$4 sm:$0xff]   ;;  %79 = vmatprep.subr.bf16.mxu0 %v158_v1  ;;  %vm75_vm0 = vcmask 130048   ;;  %v48_v7 = vld [vmem:[%s305_s2] sm:$0x3]  ;;  %s241_s1 = smov [#allocation7]  }
  0x29   :  { %80 = vmatpush1.bf16.msra.mxu0 %v160_v2  ;;  %v51_v5 = vshrl.u32 %v50_v4, 7  ;;  %s131_s14 = sshll.u32 %s241_s1, 4  ;;  %s132_s14 = int_to_ptr.vmem [resolvable:$true] %s131_s14 }
  0x2a   :  { %s206_s15 = scalar_lea.vmem %s132_s14, 512  ;;  %p211_p3 = scmp.lt.s32.totalorder %s132_s14, %s132_s14 }
  0x2b   :  { %v52_v6 = vsub.s32 0, %v51_v5  ;;  %v56_v8 = vsub.s32 1, %v51_v5  ;;  %p207_p2 = scmp.ne.s32.totalorder %s132_s14, %s206_s15  ;;  %p212_p4 = scmp.lt.s32.totalorder %s206_s15, %s206_s15 }
  0x2c   :  { %147 = vmatmul.mubr.msk.bf16.vlgmr.msra.gmra.mrb[0].mxu0 %vm75_vm0, %v161_v3 }
  0x2d   :  { %v53_v9 = vrot.slane %v48_v7, %v52_v6  ;;  %v57_v10 = vrot.slane %v48_v7, %v56_v8  ;;  %p213_p5 = por %p212_p4, %p211_p3 }
  0x2f   :  { %p214_p6 = pnand %p213_p5, %p207_p2 }
  0xff   :  { %v113_v11 = vpop.f32.mrb[0].mxu0 }
 0x100   :  { %v114_v12 = vadd.f32 %v113_v11, %v53_v9  ;;  %v115_v13 = vpop.f32.mrb[1].mxu0 }
 0x101   :  { %v116_v14 = vadd.f32 %v115_v13, %v57_v10  ;;  %v117_v15 = vpop.f32.mrb[2].mxu0 }
 0x102   :  { %122 = vst [vmem:[#allocation7] sm:$0xff] %v114_v12  ;;  %v118_v16 = vadd.f32 %v117_v15, %v53_v9  ;;  %v119_v17 = vpop.f32.mrb[3].mxu0 }
 0x103   :  { %123 = vst [vmem:[#allocation7 + $0x8] sm:$0xff] %v116_v14  ;;  %v120_v18 = vadd.f32 %v119_v17, %v57_v10 }
 0x104   :  { %124 = vst [vmem:[#allocation7 + $0x10] sm:$0xff] %v118_v16 }
 0x105   :  { %125 = vst [vmem:[#allocation7 + $0x18] sm:$0xff] %v120_v18 }
 0x106   :  { %217 = shalt.err (!%p214_p6)
}
 0x107   :  { %s218_s17 = scalar_lea.hbm %s306_s3, 512 }
 0x108   :  { %p219_p7 = scmp.ne.s32.totalorder %s306_s3, %s218_s17  ;;  %p222_p8 = scmp.lt.u32.totalorder %s218_s17, %s306_s3 }
 0x10a   :  { %p224_p9 = pnand %p222_p8, %p219_p7 }
 0x10c   :  { %227 = shalt.err (!%p224_p9)
}
 0x10d   :  { %s242_s22 = smov 256   ;;  %s243_s23 = smov 16  }
 0x10e   :  { %137 = dma.vmem_to_hbm [thread:$0]  %s132_s14, 512, %s306_s3, [#allocation4], %s242_s22, %s242_s22, %s243_s23  }
 0x10f   :  { %232 = dma.done.wait [#allocation4], 512  }
 0x110   :  { %233 = vsyncadd [#allocation4], 4294966784 }
 0x111   :  { %141 = vsyncpa [#allocation3], 1 }
 0x112   :  { %142 = vsyncpa [#allocation6], 1 }
 0x113   :  { %143 = vsyncpa [#allocation4], 1 }

</bundles_post_ra>
